<compile_context>
chip_gen: v7x
topology: tpu7x:2x2x1
jax: 0.10.0
libtpu: 0.0.40
codegen_flags: <defaults>
</compile_context>

<pallas_src>
import jax
import jax.numpy as jnp
from jax.experimental import pallas as pl
from jax.experimental.pallas import tpu as pltpu


def attention_kernel(x_ref, w_ref, b_ref, o_ref):
    # x_ref: (TB, S, H) VMEM block (TB batch elements per grid step)
    # w_ref: (1, H)     VMEM (linear weight as a lane-major row; resident)
    # b_ref: (1, 1)     SMEM scalar bias
    # o_ref: (TB, H)    VMEM output block
    x = x_ref[...].astype(jnp.float32)                      # (TB, S, H)
    w = w_ref[0].astype(jnp.float32)                        # (H,)

    # Linear(H -> 1) for every (b, s): lane-dense (TB, S) scores via
    # broadcast-multiply + reduction over the lane (H) axis.
    scores = jnp.sum(x * w, axis=-1) + b_ref[0, 0]          # (TB, S)
    scores = jnp.tanh(scores)

    # Softmax over the sequence axis (dim=1 of the PyTorch module), which is
    # the last (lane) axis in the (TB, S) score layout.
    m = jnp.max(scores, axis=-1, keepdims=True)             # (TB, 1)
    e = jnp.exp(scores - m)                                 # (TB, S)
    denom = jnp.sum(e, axis=-1, keepdims=True)              # (TB, 1)
    attn = e * pl.reciprocal(denom, approx=True)            # (TB, S)

    # outputs = sum_s (x * attn): broadcast-multiply + sublane reduce over S.
    out = jnp.sum(x * attn[:, :, None], axis=1)             # (TB, H)
    o_ref[...] = out.astype(o_ref.dtype)


def attention_pallas(x, w, b, *, tb=None):
    """x: (B, S, H); w: Linear(H,1) weight (any shape with H elements);
    b: bias (any shape with 1 element). Returns (B, H)."""
    B, S, H = x.shape
    w_row = jnp.asarray(w).reshape(1, H)
    b_s = jnp.asarray(b).reshape(1, 1)

    # Batch-tile size: 8 fills the vreg sublanes; otherwise use the whole batch
    # (a full-extent block dim always satisfies the (8,128) BlockSpec rule).
    if tb is None:
        tb = 8 if B % 8 == 0 else B
    assert B % tb == 0, (B, tb)
    grid = (B // tb,)

    # Raise the scoped VMEM limit only if the double-buffered x tile needs it.
    # TODO(synk): for very large S*H (tile > ~half of per-generation VMEM,
    # notably v7x's 64 MiB), tile S with an online softmax instead of a
    # resident-S block; unnecessary at these shapes.
    itemsize = jnp.dtype(x.dtype).itemsize
    needed = 2 * tb * S * H * itemsize          # double-buffered input blocks
    needed += 2 * tb * H * itemsize + H * 4     # output blocks + weight row
    needed += 1 << 20                           # headroom
    vmem_limit = int(needed) if needed > (16 << 20) else None

    out = pl.pallas_call(
        attention_kernel,
        out_shape=jax.ShapeDtypeStruct((B, H), x.dtype),
        grid_spec=pltpu.PrefetchScalarGridSpec(
            num_scalar_prefetch=0,
            grid=grid,
            in_specs=[
                pl.BlockSpec((tb, S, H), lambda i: (i, 0, 0)),
                pl.BlockSpec((1, H), lambda i: (0, 0)),
                pl.BlockSpec(memory_space=pltpu.SMEM),
            ],
            out_specs=pl.BlockSpec((tb, H), lambda i: (i, 0)),
        ),
        compiler_params=pltpu.CompilerParams(
            dimension_semantics=("parallel",),
            vmem_limit_bytes=vmem_limit),
    )(x, w_row, b_s)
    return out


def attention_ref(x, w, b):
    # Pure-JAX reference matching the PyTorch forward exactly.
    w_row = jnp.asarray(w).reshape(-1)                           # (H,)
    scores = jnp.tanh(jnp.einsum("bsh,h->bs", x, w_row)
                      + jnp.asarray(b).reshape(()))              # (B, S)
    weight = jax.nn.softmax(scores, axis=1)[..., None]           # (B, S, 1)
    return jnp.sum(x * weight, axis=1)                           # (B, H)


if __name__ == "__main__":
    B, S, H = 2, 8, 32  # batch, seq, hidden

    key = jax.random.PRNGKey(0)
    kx, kw, kb = jax.random.split(key, 3)

    # Deterministic parameter init mimicking nn.Linear(hidden_dim, 1):
    # uniform(-1/sqrt(H), 1/sqrt(H)) for weight (shape (1, H) like PyTorch) and bias.
    bound = 1.0 / jnp.sqrt(jnp.float32(H))
    w = jax.random.uniform(kw, (1, H), jnp.float32, -bound, bound)
    b = jax.random.uniform(kb, (1, 1), jnp.float32, -bound, bound)

    x = jax.random.normal(kx, (B, S, H), jnp.float32)

    out = attention_pallas(x, w, b)
    out = jax.block_until_ready(out)

    ref = attention_ref(x, w, b)
    assert out.shape == (B, H)
    # Tolerance accommodates the EUP approximate reciprocal used for the
    # softmax denominator; real algorithmic errors would be orders larger.
    err = jnp.max(jnp.abs(out - ref))
    assert jnp.allclose(out, ref, atol=2e-3, rtol=2e-3), f"max err {err}"

    # TODO(synk): the stateful `record`/`record_value` bookkeeping (host-side
    # running mean of attention weights) is Python-side state, not kernel math.
    print("KERNEL_OK")
</pallas_src>

<mosaic_0001>
module attributes {stable_mosaic.version = 11 : i64} {
  func.func @attention_kernel(%arg0: i32, %arg1: memref<2x8x32xf32, #tpu.memory_space<vmem>>, %arg2: memref<1x32xf32, #tpu.memory_space<vmem>>, %arg3: memref<1x1xf32, #tpu.memory_space<smem>>, %arg4: memref<2x32xf32, #tpu.memory_space<vmem>>) attributes {dimension_semantics = [#tpu.dimension_semantics<parallel>], iteration_bounds = array<i64: 1>, scalar_prefetch = 0 : i64, scratch_operands = 0 : i64, tpu.core_type = #tpu.core_type<tc>, window_params = [{transform_indices = @transform_0, window_bounds = array<i64: 2, 8, 32>}, {pipeline_mode = #tpu.pipeline_mode<synchronous>, transform_indices = @transform_1, window_bounds = array<i64: 1, 32>}, {transform_indices = @transform_2, window_bounds = array<i64: 1, 1>}, {transform_indices = @transform_3, window_bounds = array<i64: 2, 32>}]} {
    %c0 = arith.constant 0 : index
    %c0_0 = arith.constant 0 : index
    %c0_1 = arith.constant 0 : index
    %0 = vector.load %arg1[%c0, %c0_0, %c0_1] : memref<2x8x32xf32, #tpu.memory_space<vmem>>, vector<2x8x32xf32>
    %c0_2 = arith.constant 0 : index
    %c0_3 = arith.constant 0 : index
    %1 = vector.load %arg2[%c0_2, %c0_3] : memref<1x32xf32, #tpu.memory_space<vmem>>, vector<1x32xf32>
    %2 = vector.shape_cast %1 : vector<1x32xf32> to vector<32xf32>
    %3 = vector.shape_cast %2 : vector<32xf32> to vector<1x1x32xf32>
    %4 = vector.broadcast %3 : vector<1x1x32xf32> to vector<2x8x32xf32>
    %5 = arith.mulf %0, %4 : vector<2x8x32xf32>
    %cst = arith.constant dense<0.000000e+00> : vector<2x8xf32>
    %6 = vector.multi_reduction <add>, %5, %cst [2] : vector<2x8x32xf32> to vector<2x8xf32>
    %c0_4 = arith.constant 0 : index
    %c0_5 = arith.constant 0 : index
    %7 = memref.load %arg3[%c0_4, %c0_5] : memref<1x1xf32, #tpu.memory_space<smem>>
    %8 = vector.broadcast %7 : f32 to vector<2x8xf32>
    %9 = arith.addf %6, %8 : vector<2x8xf32>
    %10 = math.tanh %9 : vector<2x8xf32>
    %cst_6 = arith.constant dense<0xFF800000> : vector<2xf32>
    %11 = vector.multi_reduction <maximumf>, %10, %cst_6 [1] : vector<2x8xf32> to vector<2xf32>
    %12 = vector.shape_cast %11 : vector<2xf32> to vector<2x1xf32>
    %13 = vector.broadcast %12 : vector<2x1xf32> to vector<2x8xf32>
    %14 = arith.subf %10, %13 : vector<2x8xf32>
    %15 = math.exp %14 : vector<2x8xf32>
    %cst_7 = arith.constant dense<0.000000e+00> : vector<2xf32>
    %16 = vector.multi_reduction <add>, %15, %cst_7 [1] : vector<2x8xf32> to vector<2xf32>
    %17 = vector.shape_cast %16 : vector<2xf32> to vector<2x1xf32>
    %18 = tpu.reciprocal %17 {approx = true} : vector<2x1xf32> -> vector<2x1xf32>
    %19 = vector.broadcast %18 : vector<2x1xf32> to vector<2x8xf32>
    %20 = arith.mulf %15, %19 : vector<2x8xf32>
    %21 = vector.shape_cast %20 : vector<2x8xf32> to vector<2x8x1xf32>
    %22 = vector.broadcast %21 : vector<2x8x1xf32> to vector<2x8x32xf32>
    %23 = arith.mulf %0, %22 : vector<2x8x32xf32>
    %cst_8 = arith.constant dense<0.000000e+00> : vector<2x32xf32>
    %24 = vector.multi_reduction <add>, %23, %cst_8 [1] : vector<2x8x32xf32> to vector<2x32xf32>
    %c0_9 = arith.constant 0 : index
    %c0_10 = arith.constant 0 : index
    %25 = vector.load %arg4[%c0_9, %c0_10] : memref<2x32xf32, #tpu.memory_space<vmem>>, vector<2x32xf32>
    tpu.vector_store %arg4[%c0_9, %c0_10], %24 {strides = array<i32>} : memref<2x32xf32, #tpu.memory_space<vmem>>, vector<2x32xf32>,
    return
  }
  func.func @transform_0(%arg0: i32) -> (i32, i32, i32) {
    %c0_i32 = arith.constant 0 : i32
    %c0_i32_0 = arith.constant 0 : i32
    %c0_i32_1 = arith.constant 0 : i32
    return %arg0, %c0_i32, %c0_i32_0 : i32, i32, i32
  }
  func.func @transform_1(%arg0: i32) -> (i32, i32) {
    %c0_i32 = arith.constant 0 : i32
    %c0_i32_0 = arith.constant 0 : i32
    %c0_i32_1 = arith.constant 0 : i32
    return %c0_i32, %c0_i32_0 : i32, i32
  }
  func.func @transform_2(%arg0: i32) -> (i32, i32) {
    %c0_i32 = arith.constant 0 : i32
    %c0_i32_0 = arith.constant 0 : i32
    %c0_i32_1 = arith.constant 0 : i32
    return %c0_i32, %c0_i32_0 : i32, i32
  }
  func.func @transform_3(%arg0: i32) -> (i32, i32) {
    %c0_i32 = arith.constant 0 : i32
    %c0_i32_0 = arith.constant 0 : i32
    return %arg0, %c0_i32 : i32, i32
  }
}

</mosaic_0001>

<bundles_post_ra>
// kernel: tpu_custom_call.1
= control target key start
LH: loop header
LB: loop body
LE: loop exit
PB: predicated region body
PF: predicated region fallthrough
CT: control target
= control target key end

     0   :  { %9 = vsyncpa [#allocation4], 0  ;;  %s310_s0 = inlined_call_operand.hbm [shape: f32[2,8,32], index: 0, kind: input, shape index: {}]   ;;  %s311_s1 = inlined_call_operand.vmem [shape: f32[1,32], index: 1, kind: input, shape index: {}]   ;;  %s312_s2 = inlined_call_operand.<no memory space> [shape: f32[1,1], index: 2, kind: input, shape index: {}]   ;;  %s313_s3 = inlined_call_operand.hbm [shape: f32[2,32], index: 3, kind: output, shape index: {}]  }
   0x1   :  { %10 = vsyncpa [#allocation5], 0  ;;  %s238_s12 = smov [#allocation3]   ;;  %s190_s16 = scalar_lea.hbm %s310_s0, 256 }
   0x2   :  { %s16_s13 = sshll.u32 %s238_s12, 4  ;;  %p191_p0 = scmp.ne.s32.totalorder %s310_s0, %s190_s16  ;;  %s17_s13 = int_to_ptr.vmem [resolvable:$true] %s16_s13 }
   0x3   :  { %p194_p1 = scmp.lt.u32.totalorder %s190_s16, %s310_s0 }
   0x5   :  { %p196_p2 = pnand %p194_p1, %p191_p0 }
   0x7   :  { %199 = shalt.err (!%p196_p2)
}
   0x8   :  { %s200_s21 = scalar_lea.vmem %s17_s13, 256  ;;  %p205_p4 = scmp.lt.s32.totalorder %s17_s13, %s17_s13 }
   0x9   :  { %p201_p3 = scmp.ne.s32.totalorder %s17_s13, %s200_s21  ;;  %p206_p5 = scmp.lt.s32.totalorder %s200_s21, %s200_s21 }
   0xb   :  { %p207_p6 = por %p206_p5, %p205_p4 }
   0xd   :  { %p208_p7 = pnand %p207_p6, %p201_p3 }
   0xf   :  { %211 = shalt.err (!%p208_p7)
}
  0x10   :  { %s239_s22 = smov 128   ;;  %s240_s23 = smov 8  }
  0x11   :  { %22 = dma.hbm_to_vmem [thread:$0]  %s310_s0, 256, %s17_s13, [#allocation4], %s239_s22, %s239_s22, %s240_s23  }
  0x12   :  { %234 = dma.done.wait [#allocation4], 256  }
  0x13   :  { %235 = vsyncadd [#allocation4], 4294967040  ;;  %v275_v0 = vld [vmem:[#allocation3] sm:$0xff]  ;;  %vm41_vm0 = vcmask 261120   ;;  %v280_v2 = vld [vmem:[#allocation3 + $0x8] sm:$0xff]  ;;  %v49_v7 = vstv %s312_s2  ;;  %v56_v12 = vlaneseq  ;;  %vm66_vm1 = vcmask 1041409  }
  0x14   :  { %v172_v1 = vld [vmem:[%s311_s1] ss:$0 sm:$0xff]  ;;  %vm69_vm2 = vcmask 58368   ;;  %v241_v22 = vmov 0   ;;  %s242_s1 = smov [#allocation6]   ;;  %vm155_vm3 = vcmask 254976  }
  0x15   :  { %v39_v3 = vmul.f32 %v172_v1, %v275_v0  ;;  %v40_v4 = vmul.f32 %v172_v1, %v280_v2  ;;  %v57_v13 = vand.u32 127, %v56_v12  ;;  %v59_v14 = vshrl.u32 %v56_v12, 7  ;;  %179 = vset.pattern.permute.xlu0 %v241_v22  ;;  %178 = vset.pattern.permute.xlu1 %v241_v22  ;;  %s163_s2 = sshll.u32 %s242_s1, 4  ;;  %s164_s2 = int_to_ptr.vmem [resolvable:$true] %s163_s2 }
  0x16   :  { %s212_s29 = scalar_lea.vmem %s164_s2, 32  ;;  %p217_p9 = scmp.lt.s32.totalorder %s164_s2, %s164_s2 }
  0x17   :  { %v42_v5 = vsel %vm41_vm0, %v39_v3, 0.0  ;;  %v45_v6 = vsel %vm41_vm0, %v40_v4, 0.0  ;;  %v60_v15 = vsub.s32 %v57_v13, %v59_v14  ;;  %v76_v23 = vsub.s32 0, %v59_v14  ;;  %p213_p8 = scmp.ne.s32.totalorder %s164_s2, %s212_s29  ;;  %p218_p10 = scmp.lt.s32.totalorder %s212_s29, %s212_s29 }
  0x18   :  { %43 = vadd.xlane.f32.xlu0 %v42_v5  ;;  %v80_v24 = vsub.s32 1, %v59_v14 }
  0x19   :  { %p219_p11 = por %p218_p10, %p217_p9 }
  0x1b   :  { %p220_p12 = pnand %p219_p11, %p213_p8 }
  0x1c   :  { %46 = vadd.xlane.f32.xlu0 %v45_v6 }
  0xa5   :  { %v44_v8 = vpop.xlane.xlu0 %43 }
  0xa6   :  { %v50_v9 = vadd.f32 %v49_v7, %v44_v8 }
  0xa8   :  { %180 = vtanh.f32 %v50_v9 }
  0xa9   :  { %v47_v10 = vpop.xlane.xlu0 %46 }
  0xaa   :  { %v51_v11 = vadd.f32 %v49_v7, %v47_v10 }
  0xac   :  { %182 = vtanh.f32 %v51_v11 }
  0xb2   :  { %v181_v16 = vpop.eup %180 }
  0xb3   :  { %v61_v18 = vrot.slane %v181_v16, %v60_v15 }
  0xb6   :  { %v183_v17 = vpop.eup %182 }
  0xb7   :  { %v65_v19 = vrot.slane %v183_v17, %v60_v15 }
  0xb9   :  { %v67_v20 = vsel %vm66_vm1, %v65_v19, %v61_v18 }
  0xba   :  { %v70_v21 = vsel %vm69_vm2, %v67_v20, -inf }
  0xbb   :  { %71 = vmax.xlane.f32.xlu1 %v70_v21 }
 0x148   :  { %v72_v25 = vpop.xlane.xlu1 %71 }
 0x149   :  { %v77_v26 = vrot.slane %v72_v25, %v76_v23  ;;  %v81_v27 = vrot.slane %v72_v25, %v80_v24 }
 0x14b   :  { %v84_v28 = vsub.f32 %v181_v16, %v77_v26  ;;  %v85_v29 = vsub.f32 %v183_v17, %v81_v27 }
 0x14d   :  { %v86_v30 = vmul.f32 1.442695, %v84_v28  ;;  %v88_v31 = vmul.f32 1.442695, %v85_v29 }
 0x14f   :  { %184 = vpow2.f32 %v86_v30 }
 0x150   :  { %186 = vpow2.f32 %v88_v31 }
 0x159   :  { %v185_v32 = vpop.eup %184 }
 0x15a   :  { %v187_v33 = vpop.eup %186  ;;  %93 = vperm.xlu1 %178, %v185_v32  }
 0x15b   :  { %96 = vperm.xlu0 %179, %v187_v33  }
 0x1d9   :  { %v94_v34 = vpop.permute.xlu1 %93 }
 0x1da   :  { %v97_v35 = vpop.permute.xlu0 %96  ;;  %v101_v36 = vrot.slane %v94_v34, %v60_v15 }
 0x1db   :  { %v105_v37 = vrot.slane %v97_v35, %v60_v15 }
 0x1dd   :  { %v106_v38 = vsel %vm66_vm1, %v105_v37, %v101_v36 }
 0x1de   :  { %v108_v39 = vsel %vm69_vm2, %v106_v38, 0.0 }
 0x1df   :  { %109 = vadd.xlane.f32.xlu1 %v108_v39 }
 0x26c   :  { %v110_v40 = vpop.xlane.xlu1 %109 }
 0x26d   :  { %188 = vrcp.f32 %v110_v40 }
 0x277   :  { %v189_v41 = vpop.eup %188 }
 0x278   :  { %v116_v42 = vrot.slane %v189_v41, %v76_v23  ;;  %v120_v44 = vrot.slane %v189_v41, %v80_v24 }
 0x27a   :  { %v123_v43 = vmul.f32 %v185_v32, %v116_v42  ;;  %v124_v45 = vmul.f32 %v187_v33, %v120_v44 }
 0x27c   :  { %127 = vperm.xlu0 %179, %v123_v43  }
 0x280   :  { %132 = vperm.xlu0 %179, %v124_v45  }
 0x2fb   :  { %v128_v46 = vpop.permute.xlu0 %127 }
 0x2fc   :  { %v135_v47 = vmul.f32 %v128_v46, %v275_v0 }
 0x2fe   :  { %v137_v48 = vsel %vm41_vm0, %v135_v47, 0.0 }
 0x2ff   :  { %v138_v49 = vrot.slane %v137_v48, 4  ;;  %v133_v50 = vpop.permute.xlu0 %132 }
 0x300   :  { %v136_v51 = vmul.f32 %v133_v50, %v280_v2 }
 0x301   :  { %v139_v52 = vadd.f32 %v138_v49, %v137_v48 }
 0x302   :  { %v144_v53 = vsel %vm41_vm0, %v136_v51, 0.0 }
 0x303   :  { %v140_v54 = vrot.slane %v139_v52, 2  ;;  %v145_v55 = vrot.slane %v144_v53, 4 }
 0x305   :  { %v141_v56 = vadd.f32 %v140_v54, %v139_v52  ;;  %v146_v57 = vadd.f32 %v145_v55, %v144_v53 }
 0x307   :  { %v147_v58 = vrot.slane %v146_v57, 2  ;;  %v142_v59 = vrot.slane %v141_v56, 1 }
 0x309   :  { %v148_v60 = vadd.f32 %v147_v58, %v146_v57  ;;  %v143_v62 = vadd.f32 %v142_v59, %v141_v56 }
 0x30b   :  { %v149_v61 = vrot.slane %v148_v60, 1 }
 0x30d   :  { %v150_v63 = vadd.f32 %v149_v61, %v148_v60 }
 0x30f   :  { %v153_v0 = vsel %vm66_vm1, %v150_v63, %v143_v62 }
 0x310   :  { %156 = vst.msk [vmem:[#allocation6] sm:$0x3] %vm155_vm3, %v153_v0 }
 0x311   :  { %223 = shalt.err (!%p220_p12)
}
 0x312   :  { %s224_s5 = scalar_lea.hbm %s313_s3, 32 }
 0x313   :  { %p225_p13 = scmp.ne.s32.totalorder %s313_s3, %s224_s5  ;;  %p228_p0 = scmp.lt.u32.totalorder %s224_s5, %s313_s3 }
 0x315   :  { %p230_p1 = pnand %p228_p0, %p225_p13 }
 0x317   :  { %233 = shalt.err (!%p230_p1)
}
 0x318   :  { %166 = dma.vmem_to_hbm [thread:$0]  %s164_s2, 32, %s313_s3, [#allocation5]  }
 0x319   :  { %236 = dma.done.wait [#allocation5], 32  }
 0x31a   :  { %237 = vsyncadd [#allocation5], 4294967264 }
 0x31b   :  { %170 = vsyncpa [#allocation4], 1 }
 0x31c   :  { %171 = vsyncpa [#allocation5], 1 }

</bundles_post_ra>
